<compile_context>
chip_gen: v5e
topology: v5e:2x2
jax: 0.10.0
libtpu: 0.0.40
codegen_flags: <defaults>
</compile_context>

<pallas_src>
import functools

import jax
import jax.numpy as jnp
from jax.experimental import pallas as pl
from jax.experimental.pallas import tpu as pltpu


def _linear_relu_vpu(w, b, h):
    """relu(W @ h + b), computed on the VPU.

    w: (J, K)   PyTorch (out_features, in_features) layout (loaded value).
    b: (J, 1)
    h: (K, TB)  feature-major activations, batch on the lane axis.
    returns (J, TB)
    """
    K = w.shape[1]
    # Unrolled rank-1 accumulation: (J, 1) column  x  (1, TB) row  ->  (J, TB).
    acc = w[:, 0:1] * h[0:1, :]
    for k in range(1, K):  # K <= 5: tiny static unroll, pure VPU FMAs
        acc = acc + w[:, k:k + 1] * h[k:k + 1, :]
    return jnp.maximum(acc + b, 0.0)


def mlp_kernel(x_ref, w1_ref, b1_ref, w2_ref, b2_ref, w3_ref, b3_ref, o_ref):
    h = x_ref[...]                                      # (IN, TB), lane-dense
    h = _linear_relu_vpu(w1_ref[...], b1_ref[...], h)   # (H1, TB)
    h = _linear_relu_vpu(w2_ref[...], b2_ref[...], h)   # (H2, TB)
    h = _linear_relu_vpu(w3_ref[...], b3_ref[...], h)   # (OUT, TB)
    o_ref[...] = h.astype(o_ref.dtype)                  # lane-dense store


@functools.partial(jax.jit, static_argnames=("tb",))
def mlp_forward(x, w1, b1, w2, b2, w3, b3, *, tb=512):
    """x: (B, in_features). Weights in PyTorch convention (out, in); bias (out,)."""
    B, in_features = x.shape
    h1 = w1.shape[0]
    h2 = w2.shape[0]
    out_features = w3.shape[0]

    # Batch tile lives on the lane axis -> keep it a multiple of 128, but never
    # wider than the 128-rounded batch itself (avoids pointless padded DMA).
    tb = max(128, (tb // 128) * 128)
    tb = min(tb, pl.cdiv(B, 128) * 128)
    bp = pl.cdiv(B, tb) * tb

    # Feature-major activations: batch on lanes.  (Layout plumbing only — a
    # production pipeline would keep activations feature-major end-to-end.)
    xt = jnp.pad(x.T, ((0, 0), (0, bp - B)))

    out_t = pl.pallas_call(
        mlp_kernel,
        out_shape=jax.ShapeDtypeStruct((out_features, bp), jnp.float32),
        grid_spec=pltpu.PrefetchScalarGridSpec(
            num_scalar_prefetch=0,
            grid=(bp // tb,),
            in_specs=[
                pl.BlockSpec((in_features, tb), lambda i: (0, i)),    # x tile
                pl.BlockSpec((h1, in_features), lambda i: (0, 0)),    # w1 (resident)
                pl.BlockSpec((h1, 1), lambda i: (0, 0)),              # b1
                pl.BlockSpec((h2, h1), lambda i: (0, 0)),             # w2
                pl.BlockSpec((h2, 1), lambda i: (0, 0)),              # b2
                pl.BlockSpec((out_features, h2), lambda i: (0, 0)),   # w3
                pl.BlockSpec((out_features, 1), lambda i: (0, 0)),    # b3
            ],
            out_specs=pl.BlockSpec((out_features, tb), lambda i: (0, i)),
        ),
        compiler_params=pltpu.CompilerParams(
            dimension_semantics=("parallel",),     # megacore-shardable on v7x
            vmem_limit_bytes=16 * 1024 * 1024,     # actual footprint < 64 KiB; safe under v7x's 64 MiB
        ),
    )(xt, w1, b1[:, None], w2, b2[:, None], w3, b3[:, None])

    return out_t[:, :B].T


def init_params(key, in_features=5, h1=4, h2=3, out_features=2):
    """Deterministic init mimicking nn.Linear shapes (weight: (out, in), bias: (out,))."""
    ks = jax.random.split(key, 6)

    def linear(kw, kb, fan_in, fan_out):
        bound = 1.0 / jnp.sqrt(fan_in)
        w = jax.random.uniform(kw, (fan_out, fan_in), jnp.float32, -bound, bound)
        b = jax.random.uniform(kb, (fan_out,), jnp.float32, -bound, bound)
        return w, b

    w1, b1 = linear(ks[0], ks[1], in_features, h1)
    w2, b2 = linear(ks[2], ks[3], h1, h2)
    w3, b3 = linear(ks[4], ks[5], h2, out_features)
    return w1, b1, w2, b2, w3, b3


def reference_forward(x, w1, b1, w2, b2, w3, b3):
    h = jnp.maximum(x @ w1.T + b1, 0.0)
    h = jnp.maximum(h @ w2.T + b2, 0.0)
    return jnp.maximum(h @ w3.T + b3, 0.0)


if __name__ == "__main__":
    key = jax.random.PRNGKey(0)
    k_x, k_p = jax.random.split(key)

    in_features, h1, h2, out_features = 5, 4, 3, 2
    params = init_params(k_p, in_features, h1, h2, out_features)

    # Small, module-consistent shapes.  B=8 exercises batch padding (single grid
    # step); B=300 with tb=128 exercises a 3-step pipelined grid + ragged batch.
    for B in (8, 300):
        x = jax.random.normal(jax.random.fold_in(k_x, B), (B, in_features), jnp.float32)
        out = jax.block_until_ready(mlp_forward(x, *params, tb=128))
        ref = reference_forward(x, *params)
        assert out.shape == (B, out_features)
        assert jnp.allclose(out, ref, atol=1e-5, rtol=1e-5), "mismatch vs reference"

    print("KERNEL_OK")
</pallas_src>

<mosaic_0001>
module attributes {stable_mosaic.version = 11 : i64} {
  func.func @mlp_kernel(%arg0: i32, %arg1: memref<5x128xf32, #tpu.memory_space<vmem>>, %arg2: memref<4x5xf32, #tpu.memory_space<vmem>>, %arg3: memref<4x1xf32, #tpu.memory_space<vmem>>, %arg4: memref<3x4xf32, #tpu.memory_space<vmem>>, %arg5: memref<3x1xf32, #tpu.memory_space<vmem>>, %arg6: memref<2x3xf32, #tpu.memory_space<vmem>>, %arg7: memref<2x1xf32, #tpu.memory_space<vmem>>, %arg8: memref<2x128xf32, #tpu.memory_space<vmem>>) attributes {dimension_semantics = [#tpu.dimension_semantics<parallel>], iteration_bounds = array<i64: 1>, scalar_prefetch = 0 : i64, scratch_operands = 0 : i64, tpu.core_type = #tpu.core_type<tc>, window_params = [{transform_indices = @transform_0, window_bounds = array<i64: 5, 128>}, {pipeline_mode = #tpu.pipeline_mode<synchronous>, transform_indices = @transform_1, window_bounds = array<i64: 4, 5>}, {pipeline_mode = #tpu.pipeline_mode<synchronous>, transform_indices = @transform_2, window_bounds = array<i64: 4, 1>}, {pipeline_mode = #tpu.pipeline_mode<synchronous>, transform_indices = @transform_3, window_bounds = array<i64: 3, 4>}, {pipeline_mode = #tpu.pipeline_mode<synchronous>, transform_indices = @transform_4, window_bounds = array<i64: 3, 1>}, {pipeline_mode = #tpu.pipeline_mode<synchronous>, transform_indices = @transform_5, window_bounds = array<i64: 2, 3>}, {pipeline_mode = #tpu.pipeline_mode<synchronous>, transform_indices = @transform_6, window_bounds = array<i64: 2, 1>}, {transform_indices = @transform_7, window_bounds = array<i64: 2, 128>}]} {
    %c0 = arith.constant 0 : index
    %c0_0 = arith.constant 0 : index
    %0 = vector.load %arg1[%c0, %c0_0] : memref<5x128xf32, #tpu.memory_space<vmem>>, vector<5x128xf32>
    %c0_1 = arith.constant 0 : index
    %c0_2 = arith.constant 0 : index
    %1 = vector.load %arg2[%c0_1, %c0_2] : memref<4x5xf32, #tpu.memory_space<vmem>>, vector<4x5xf32>
    %c0_3 = arith.constant 0 : index
    %c0_4 = arith.constant 0 : index
    %2 = vector.load %arg3[%c0_3, %c0_4] : memref<4x1xf32, #tpu.memory_space<vmem>>, vector<4x1xf32>
    %3 = vector.extract_strided_slice %1 {offsets = [0, 0], sizes = [4, 1], strides = [1, 1]} : vector<4x5xf32> to vector<4x1xf32>
    %4 = vector.extract_strided_slice %0 {offsets = [0, 0], sizes = [1, 128], strides = [1, 1]} : vector<5x128xf32> to vector<1x128xf32>
    %5 = vector.broadcast %3 : vector<4x1xf32> to vector<4x128xf32>
    %6 = vector.broadcast %4 : vector<1x128xf32> to vector<4x128xf32>
    %7 = arith.mulf %5, %6 : vector<4x128xf32>
    %8 = vector.extract_strided_slice %1 {offsets = [0, 1], sizes = [4, 1], strides = [1, 1]} : vector<4x5xf32> to vector<4x1xf32>
    %9 = vector.extract_strided_slice %0 {offsets = [1, 0], sizes = [1, 128], strides = [1, 1]} : vector<5x128xf32> to vector<1x128xf32>
    %10 = vector.broadcast %8 : vector<4x1xf32> to vector<4x128xf32>
    %11 = vector.broadcast %9 : vector<1x128xf32> to vector<4x128xf32>
    %12 = arith.mulf %10, %11 : vector<4x128xf32>
    %13 = arith.addf %7, %12 : vector<4x128xf32>
    %14 = vector.extract_strided_slice %1 {offsets = [0, 2], sizes = [4, 1], strides = [1, 1]} : vector<4x5xf32> to vector<4x1xf32>
    %15 = vector.extract_strided_slice %0 {offsets = [2, 0], sizes = [1, 128], strides = [1, 1]} : vector<5x128xf32> to vector<1x128xf32>
    %16 = vector.broadcast %14 : vector<4x1xf32> to vector<4x128xf32>
    %17 = vector.broadcast %15 : vector<1x128xf32> to vector<4x128xf32>
    %18 = arith.mulf %16, %17 : vector<4x128xf32>
    %19 = arith.addf %13, %18 : vector<4x128xf32>
    %20 = vector.extract_strided_slice %1 {offsets = [0, 3], sizes = [4, 1], strides = [1, 1]} : vector<4x5xf32> to vector<4x1xf32>
    %21 = vector.extract_strided_slice %0 {offsets = [3, 0], sizes = [1, 128], strides = [1, 1]} : vector<5x128xf32> to vector<1x128xf32>
    %22 = vector.broadcast %20 : vector<4x1xf32> to vector<4x128xf32>
    %23 = vector.broadcast %21 : vector<1x128xf32> to vector<4x128xf32>
    %24 = arith.mulf %22, %23 : vector<4x128xf32>
    %25 = arith.addf %19, %24 : vector<4x128xf32>
    %26 = vector.extract_strided_slice %1 {offsets = [0, 4], sizes = [4, 1], strides = [1, 1]} : vector<4x5xf32> to vector<4x1xf32>
    %27 = vector.extract_strided_slice %0 {offsets = [4, 0], sizes = [1, 128], strides = [1, 1]} : vector<5x128xf32> to vector<1x128xf32>
    %28 = vector.broadcast %26 : vector<4x1xf32> to vector<4x128xf32>
    %29 = vector.broadcast %27 : vector<1x128xf32> to vector<4x128xf32>
    %30 = arith.mulf %28, %29 : vector<4x128xf32>
    %31 = arith.addf %25, %30 : vector<4x128xf32>
    %32 = vector.broadcast %2 : vector<4x1xf32> to vector<4x128xf32>
    %33 = arith.addf %31, %32 : vector<4x128xf32>
    %cst = arith.constant 0.000000e+00 : f32
    %34 = vector.broadcast %cst : f32 to vector<4x128xf32>
    %35 = arith.maximumf %33, %34 : vector<4x128xf32>
    %c0_5 = arith.constant 0 : index
    %c0_6 = arith.constant 0 : index
    %36 = vector.load %arg4[%c0_5, %c0_6] : memref<3x4xf32, #tpu.memory_space<vmem>>, vector<3x4xf32>
    %c0_7 = arith.constant 0 : index
    %c0_8 = arith.constant 0 : index
    %37 = vector.load %arg5[%c0_7, %c0_8] : memref<3x1xf32, #tpu.memory_space<vmem>>, vector<3x1xf32>
    %38 = vector.extract_strided_slice %36 {offsets = [0, 0], sizes = [3, 1], strides = [1, 1]} : vector<3x4xf32> to vector<3x1xf32>
    %39 = vector.extract_strided_slice %35 {offsets = [0, 0], sizes = [1, 128], strides = [1, 1]} : vector<4x128xf32> to vector<1x128xf32>
    %40 = vector.broadcast %38 : vector<3x1xf32> to vector<3x128xf32>
    %41 = vector.broadcast %39 : vector<1x128xf32> to vector<3x128xf32>
    %42 = arith.mulf %40, %41 : vector<3x128xf32>
    %43 = vector.extract_strided_slice %36 {offsets = [0, 1], sizes = [3, 1], strides = [1, 1]} : vector<3x4xf32> to vector<3x1xf32>
    %44 = vector.extract_strided_slice %35 {offsets = [1, 0], sizes = [1, 128], strides = [1, 1]} : vector<4x128xf32> to vector<1x128xf32>
    %45 = vector.broadcast %43 : vector<3x1xf32> to vector<3x128xf32>
    %46 = vector.broadcast %44 : vector<1x128xf32> to vector<3x128xf32>
    %47 = arith.mulf %45, %46 : vector<3x128xf32>
    %48 = arith.addf %42, %47 : vector<3x128xf32>
    %49 = vector.extract_strided_slice %36 {offsets = [0, 2], sizes = [3, 1], strides = [1, 1]} : vector<3x4xf32> to vector<3x1xf32>
    %50 = vector.extract_strided_slice %35 {offsets = [2, 0], sizes = [1, 128], strides = [1, 1]} : vector<4x128xf32> to vector<1x128xf32>
    %51 = vector.broadcast %49 : vector<3x1xf32> to vector<3x128xf32>
    %52 = vector.broadcast %50 : vector<1x128xf32> to vector<3x128xf32>
    %53 = arith.mulf %51, %52 : vector<3x128xf32>
    %54 = arith.addf %48, %53 : vector<3x128xf32>
    %55 = vector.extract_strided_slice %36 {offsets = [0, 3], sizes = [3, 1], strides = [1, 1]} : vector<3x4xf32> to vector<3x1xf32>
    %56 = vector.extract_strided_slice %35 {offsets = [3, 0], sizes = [1, 128], strides = [1, 1]} : vector<4x128xf32> to vector<1x128xf32>
    %57 = vector.broadcast %55 : vector<3x1xf32> to vector<3x128xf32>
    %58 = vector.broadcast %56 : vector<1x128xf32> to vector<3x128xf32>
    %59 = arith.mulf %57, %58 : vector<3x128xf32>
    %60 = arith.addf %54, %59 : vector<3x128xf32>
    %61 = vector.broadcast %37 : vector<3x1xf32> to vector<3x128xf32>
    %62 = arith.addf %60, %61 : vector<3x128xf32>
    %cst_9 = arith.constant 0.000000e+00 : f32
    %63 = vector.broadcast %cst_9 : f32 to vector<3x128xf32>
    %64 = arith.maximumf %62, %63 : vector<3x128xf32>
    %c0_10 = arith.constant 0 : index
    %c0_11 = arith.constant 0 : index
    %65 = vector.load %arg6[%c0_10, %c0_11] : memref<2x3xf32, #tpu.memory_space<vmem>>, vector<2x3xf32>
    %c0_12 = arith.constant 0 : index
    %c0_13 = arith.constant 0 : index
    %66 = vector.load %arg7[%c0_12, %c0_13] : memref<2x1xf32, #tpu.memory_space<vmem>>, vector<2x1xf32>
    %67 = vector.extract_strided_slice %65 {offsets = [0, 0], sizes = [2, 1], strides = [1, 1]} : vector<2x3xf32> to vector<2x1xf32>
    %68 = vector.extract_strided_slice %64 {offsets = [0, 0], sizes = [1, 128], strides = [1, 1]} : vector<3x128xf32> to vector<1x128xf32>
    %69 = vector.broadcast %67 : vector<2x1xf32> to vector<2x128xf32>
    %70 = vector.broadcast %68 : vector<1x128xf32> to vector<2x128xf32>
    %71 = arith.mulf %69, %70 : vector<2x128xf32>
    %72 = vector.extract_strided_slice %65 {offsets = [0, 1], sizes = [2, 1], strides = [1, 1]} : vector<2x3xf32> to vector<2x1xf32>
    %73 = vector.extract_strided_slice %64 {offsets = [1, 0], sizes = [1, 128], strides = [1, 1]} : vector<3x128xf32> to vector<1x128xf32>
    %74 = vector.broadcast %72 : vector<2x1xf32> to vector<2x128xf32>
    %75 = vector.broadcast %73 : vector<1x128xf32> to vector<2x128xf32>
    %76 = arith.mulf %74, %75 : vector<2x128xf32>
    %77 = arith.addf %71, %76 : vector<2x128xf32>
    %78 = vector.extract_strided_slice %65 {offsets = [0, 2], sizes = [2, 1], strides = [1, 1]} : vector<2x3xf32> to vector<2x1xf32>
    %79 = vector.extract_strided_slice %64 {offsets = [2, 0], sizes = [1, 128], strides = [1, 1]} : vector<3x128xf32> to vector<1x128xf32>
    %80 = vector.broadcast %78 : vector<2x1xf32> to vector<2x128xf32>
    %81 = vector.broadcast %79 : vector<1x128xf32> to vector<2x128xf32>
    %82 = arith.mulf %80, %81 : vector<2x128xf32>
    %83 = arith.addf %77, %82 : vector<2x128xf32>
    %84 = vector.broadcast %66 : vector<2x1xf32> to vector<2x128xf32>
    %85 = arith.addf %83, %84 : vector<2x128xf32>
    %cst_14 = arith.constant 0.000000e+00 : f32
    %86 = vector.broadcast %cst_14 : f32 to vector<2x128xf32>
    %87 = arith.maximumf %85, %86 : vector<2x128xf32>
    %c0_15 = arith.constant 0 : index
    %c0_16 = arith.constant 0 : index
    %88 = vector.load %arg8[%c0_15, %c0_16] : memref<2x128xf32, #tpu.memory_space<vmem>>, vector<2x128xf32>
    tpu.vector_store %arg8[%c0_15, %c0_16], %87 {strides = array<i32>} : memref<2x128xf32, #tpu.memory_space<vmem>>, vector<2x128xf32>,
    return
  }
  func.func @transform_0(%arg0: i32) -> (i32, i32) {
    %c0_i32 = arith.constant 0 : i32
    %c0_i32_0 = arith.constant 0 : i32
    return %c0_i32, %arg0 : i32, i32
  }
  func.func @transform_1(%arg0: i32) -> (i32, i32) {
    %c0_i32 = arith.constant 0 : i32
    %c0_i32_0 = arith.constant 0 : i32
    %c0_i32_1 = arith.constant 0 : i32
    return %c0_i32, %c0_i32_0 : i32, i32
  }
  func.func @transform_2(%arg0: i32) -> (i32, i32) {
    %c0_i32 = arith.constant 0 : i32
    %c0_i32_0 = arith.constant 0 : i32
    %c0_i32_1 = arith.constant 0 : i32
    return %c0_i32, %c0_i32_0 : i32, i32
  }
  func.func @transform_3(%arg0: i32) -> (i32, i32) {
    %c0_i32 = arith.constant 0 : i32
    %c0_i32_0 = arith.constant 0 : i32
    %c0_i32_1 = arith.constant 0 : i32
    return %c0_i32, %c0_i32_0 : i32, i32
  }
  func.func @transform_4(%arg0: i32) -> (i32, i32) {
    %c0_i32 = arith.constant 0 : i32
    %c0_i32_0 = arith.constant 0 : i32
    %c0_i32_1 = arith.constant 0 : i32
    return %c0_i32, %c0_i32_0 : i32, i32
  }
  func.func @transform_5(%arg0: i32) -> (i32, i32) {
    %c0_i32 = arith.constant 0 : i32
    %c0_i32_0 = arith.constant 0 : i32
    %c0_i32_1 = arith.constant 0 : i32
    return %c0_i32, %c0_i32_0 : i32, i32
  }
  func.func @transform_6(%arg0: i32) -> (i32, i32) {
    %c0_i32 = arith.constant 0 : i32
    %c0_i32_0 = arith.constant 0 : i32
    %c0_i32_1 = arith.constant 0 : i32
    return %c0_i32, %c0_i32_0 : i32, i32
  }
  func.func @transform_7(%arg0: i32) -> (i32, i32) {
    %c0_i32 = arith.constant 0 : i32
    %c0_i32_0 = arith.constant 0 : i32
    return %c0_i32, %arg0 : i32, i32
  }
}

</mosaic_0001>

<bundles_post_ra>
// kernel: mlp_forward.1
= control target key start
LH: loop header
LB: loop body
LE: loop exit
PB: predicated region body
PF: predicated region fallthrough
CT: control target
= control target key end

     0   :  { %v162_v0 = vmov 2   ;;  %v163_v1 = vmov 0   ;;  %v164_v3 = vmov 4   ;;  %v165_v4 = vmov 3   ;;  %s231_s1 = inlined_call_operand.vmem [shape: f32[4,5], index: 1, kind: input, shape index: {}]   ;;  %s232_s2 = inlined_call_operand.vmem [shape: f32[4,1], index: 2, kind: input, shape index: {}]   ;;  %s233_s3 = inlined_call_operand.vmem [shape: f32[3,4], index: 3, kind: input, shape index: {}]   ;;  %s234_s5 = inlined_call_operand.vmem [shape: f32[2,3], index: 5, kind: input, shape index: {}]   ;;  %s235_s4 = inlined_call_operand.vmem [shape: f32[3,1], index: 4, kind: input, shape index: {}]   ;;  %s236_s6 = inlined_call_operand.vmem [shape: f32[2,1], index: 6, kind: input, shape index: {}]   ;;  %s237_s0 = inlined_call_operand.vmem [shape: f32[5,128], index: 0, kind: input, shape index: {}]   ;;  %s238_s7 = inlined_call_operand.vmem [shape: f32[2,128], index: 7, kind: output, shape index: {}]  }
   0x1   :  { %150 = vset.pattern.permute.xlu1 %v162_v0  ;;  %148 = vset.pattern.permute.xlu0 %v163_v1  ;;  %v27_v2 = vld [vmem:[%s231_s1] sm:$0xf]  ;;  %v166_v5 = vmov 1  }
   0x2   :  { %44 = vperm.xlu1 %150, %v27_v2   ;;  %31 = vperm.xlu0 %148, %v27_v2   ;;  %v28_v6 = vld [vmem:[%s232_s2] sm:$0xf] }
   0x3   :  { %152 = vset.pattern.permute.xlu2 %v164_v3  ;;  %v71_v7 = vld [vmem:[%s233_s3] sm:$0x7] }
   0x4   :  { %58 = vperm.xlu2 %152, %v27_v2   ;;  %v108_v8 = vld [vmem:[%s234_s5] sm:$0x3] }
   0x5   :  { %v72_v9 = vld [vmem:[%s235_s4] sm:$0x7] }
   0x6   :  { %v109_v10 = vld [vmem:[%s236_s6] sm:$0x3] }
   0x7   :  { %v26_v14 = vld [vmem:[%s237_s0] sm:$0x1f] }
   0x8   :  { %v34_v15 = vperm.slane %v26_v14, 0  ;;  %v40_v16 = vperm.slane %v26_v14, 1  ;;  %v47_v18 = vperm.slane %v26_v14, 2  ;;  %v54_v23 = vperm.slane %v26_v14, 3 }
   0x9   :  { %v61_v25 = vperm.slane %v26_v14, 4 }
   0xa   :  { %151 = vset.pattern.permute.xlu1 %v165_v4  ;;  %149 = vset.pattern.permute.xlu0 %v166_v5 }
   0xb   :  { %51 = vperm.xlu1 %151, %v27_v2   ;;  %37 = vperm.xlu0 %149, %v27_v2  }
   0xc   :  { %153 = vset.pattern.permute.xlu2 %v163_v1 }
   0xd   :  { %66 = vperm.xlu2 %153, %v28_v6  }
  0x13   :  { %154 = vset.pattern.permute.xlu1 %v163_v1  ;;  %156 = vset.pattern.permute.xlu0 %v162_v0 }
  0x14   :  { %75 = vperm.xlu1 %154, %v71_v7   ;;  %88 = vperm.xlu0 %156, %v71_v7  }
  0x15   :  { %155 = vset.pattern.permute.xlu2 %v166_v5 }
  0x16   :  { %81 = vperm.xlu2 %155, %v71_v7  }
  0x1c   :  { %157 = vset.pattern.permute.xlu1 %v165_v4  ;;  %125 = vperm.xlu0 %156, %v108_v8  }
  0x1d   :  { %95 = vperm.xlu1 %157, %v71_v7  }
  0x1e   :  { %158 = vset.pattern.permute.xlu2 %v163_v1 }
  0x1f   :  { %103 = vperm.xlu2 %158, %v72_v9  }
  0x24   :  { %161 = vset.pattern.permute.xlu0 %v163_v1 }
  0x25   :  { %159 = vset.pattern.permute.xlu1 %v163_v1 }
  0x26   :  { %112 = vperm.xlu1 %159, %v108_v8  }
  0x27   :  { %160 = vset.pattern.permute.xlu2 %v166_v5 }
  0x28   :  { %118 = vperm.xlu2 %160, %v108_v8  }
  0x2e   :  { %133 = vperm.xlu1 %159, %v109_v10  }
  0x5e   :  { %v59_v11 = vpop.permute.xlu2 %58 }
  0x5f   :  { %v62_v29 = vmul.f32 %v61_v25, %v59_v11 }
  0x67   :  { %v67_v17 = vpop.permute.xlu2 %66 }
  0x70   :  { %v82_v31 = vpop.permute.xlu2 %81 }
  0x74   :  { %v32_v12 = vpop.permute.xlu0 %31  ;;  %v45_v13 = vpop.permute.xlu1 %44 }
  0x75   :  { %v35_v21 = vmul.f32 %v34_v15, %v32_v12  ;;  %v48_v24 = vmul.f32 %v47_v18, %v45_v13 }
  0x79   :  { %v104_v41 = vpop.permute.xlu2 %103 }
  0x7d   :  { %v38_v19 = vpop.permute.xlu0 %37  ;;  %v52_v20 = vpop.permute.xlu1 %51 }
  0x7e   :  { %v41_v22 = vmul.f32 %v40_v16, %v38_v19  ;;  %v55_v28 = vmul.f32 %v54_v23, %v52_v20 }
  0x80   :  { %v42_v26 = vadd.f32 %v41_v22, %v35_v21 }
  0x82   :  { %v49_v27 = vadd.f32 %v48_v24, %v42_v26  ;;  %v119_v53 = vpop.permute.xlu2 %118 }
  0x84   :  { %v56_v30 = vadd.f32 %v55_v28, %v49_v27 }
  0x86   :  { %v63_v32 = vadd.f32 %v62_v29, %v56_v30  ;;  %v76_v33 = vpop.permute.xlu1 %75  ;;  %v89_v42 = vpop.permute.xlu0 %88 }
  0x88   :  { %v69_v34 = vadd.f32 %v67_v17, %v63_v32 }
  0x8a   :  { %v70_v35 = vmax.f32 %v69_v34, 0.0 }
  0x8c   :  { %v78_v36 = vperm.slane %v70_v35, 0  ;;  %v91_v37 = vperm.slane %v70_v35, 2  ;;  %v84_v38 = vperm.slane %v70_v35, 1  ;;  %v98_v46 = vperm.slane %v70_v35, 3 }
  0x8e   :  { %v79_v39 = vmul.f32 %v78_v36, %v76_v33  ;;  %v85_v40 = vmul.f32 %v84_v38, %v82_v31  ;;  %v92_v44 = vmul.f32 %v91_v37, %v89_v42  ;;  %v126_v59 = vpop.permute.xlu0 %125 }
  0x8f   :  { %v96_v43 = vpop.permute.xlu1 %95 }
  0x90   :  { %v86_v45 = vadd.f32 %v85_v40, %v79_v39  ;;  %v99_v47 = vmul.f32 %v98_v46, %v96_v43 }
  0x92   :  { %v93_v48 = vadd.f32 %v92_v44, %v86_v45 }
  0x94   :  { %v100_v49 = vadd.f32 %v99_v47, %v93_v48 }
  0x96   :  { %v106_v50 = vadd.f32 %v104_v41, %v100_v49 }
  0x98   :  { %v107_v51 = vmax.f32 %v106_v50, 0.0  ;;  %v113_v52 = vpop.permute.xlu1 %112 }
  0x9a   :  { %v128_v54 = vperm.slane %v107_v51, 2  ;;  %v115_v55 = vperm.slane %v107_v51, 0  ;;  %v121_v56 = vperm.slane %v107_v51, 1 }
  0x9c   :  { %v116_v57 = vmul.f32 %v115_v55, %v113_v52  ;;  %v122_v58 = vmul.f32 %v121_v56, %v119_v53  ;;  %v129_v61 = vmul.f32 %v128_v54, %v126_v59 }
  0x9e   :  { %v123_v60 = vadd.f32 %v122_v58, %v116_v57 }
  0xa0   :  { %v134_v62 = vpop.permute.xlu1 %133  ;;  %v130_v63 = vadd.f32 %v129_v61, %v123_v60 }
  0xa2   :  { %v136_v0 = vadd.f32 %v134_v62, %v130_v63 }
  0xa4   :  { %v137_v1 = vmax.f32 %v136_v0, 0.0 }
  0xa6   :  { %138 = vst [vmem:[%s238_s7] sm:$0x3] %v137_v1 }

</bundles_post_ra>
